<compile_context>
chip_gen: v7x
topology: tpu7x:2x2x1
jax: 0.10.0
libtpu: 0.0.40
codegen_flags: <defaults>
</compile_context>

<pallas_src>
import functools
import math

import jax
import jax.numpy as jnp
from jax.experimental import pallas as pl
from jax.experimental.pallas import tpu as pltpu


def _copy_kernel(x_ref, o_ref):
    # Pure copy: the flip is expressed by the output index_map, not compute.
    o_ref[...] = x_ref[...]


def _sublane_pack(itemsize):
    # Sub-32-bit dtypes pack along sublanes: f32 -> 8, bf16 -> 16, int8 -> 32.
    return {4: 8, 2: 16, 1: 32}.get(itemsize, 8)


def _round_up(a, b):
    return ((a + b - 1) // b) * b


@functools.partial(
    jax.jit, static_argnames=("axis", "min_pallas_bytes", "max_block_bytes"))
def feature_flip_forward(x, *, axis=1,
                         min_pallas_bytes=1 << 20,
                         max_block_bytes=8 << 20):
    """Pallas implementation of FeatureFlipBlock.forward: flip x along `axis`."""
    ndim = x.ndim
    axis = axis % ndim
    shape = x.shape
    n = shape[axis]
    itemsize = jnp.dtype(x.dtype).itemsize
    total_bytes = x.size * itemsize

    # Degenerate flips are the identity.
    if n <= 1 or x.size == 0:
        return x

    # Tiny tensors: pallas_call fixed cost + pipeline prologue dominate a
    # microsecond-scale copy; XLA's reverse streams these fine.
    if total_bytes < min_pallas_bytes:
        return jnp.flip(x, axis=axis)

    outer = math.prod(shape[:axis]) if axis > 0 else 1
    inner = math.prod(shape[axis + 1:]) if axis < ndim - 1 else 1

    # Minor-most (or effectively minor-most) axis: the reversal would have to
    # happen inside the 128-lane vreg, not as a DMA relabel.
    # TODO(synk): add an in-kernel lane-reverse path for axis == ndim-1.
    if inner == 1:
        return jnp.flip(x, axis=axis)

    sublane = _sublane_pack(itemsize)

    # Fold `inner` into a sublane-dense (s_total, lane) pair so the trailing
    # block dims map onto native (sublane, 128) VMEM tiles.
    if inner % 128 == 0:
        lane = 128
        s_total = inner // 128
    else:
        lane = inner          # full-extent lane block (allowed); padded to 128
        s_total = 1
    lane_padded = _round_up(lane, 128)

    # Pick tile_s (block extent on the folded-inner sublane axis), accounting
    # for layout padding so the VMEM math is honest.
    full_s_bytes = _round_up(s_total, sublane) * lane_padded * itemsize
    if full_s_bytes <= max_block_bytes:
        tile_s = s_total
    else:
        tile_s = (max_block_bytes // (lane_padded * itemsize)) // sublane * sublane
        tile_s = max(sublane, tile_s)
        tile_s = min(tile_s, s_total)
    block_s_bytes = _round_up(tile_s, sublane) * lane_padded * itemsize

    if block_s_bytes > 2 * max_block_bytes:
        # Huge, non-128-multiple inner: layout constraints force a block too
        # big to double-buffer comfortably. Let XLA handle this rare case.
        # TODO(synk): tile a ragged lane axis instead of falling back.
        return jnp.flip(x, axis=axis)

    # Tile the outer (batch-like) axis against the remaining block budget.
    tile_o = max(1, min(outer, max_block_bytes // block_s_bytes))

    grid = (pl.cdiv(outer, tile_o), n, pl.cdiv(s_total, tile_s))
    block = (tile_o, 1, tile_s, lane)

    x4 = x.reshape(outer, n, s_total, lane)

    y4 = pl.pallas_call(
        _copy_kernel,
        out_shape=jax.ShapeDtypeStruct((outer, n, s_total, lane), x.dtype),
        grid=grid,
        in_specs=[pl.BlockSpec(block, lambda o, c, s: (o, c, s, 0))],
        # The flip: block c along the flipped axis is written to slot n-1-c.
        out_specs=pl.BlockSpec(block, lambda o, c, s: (o, n - 1 - c, s, 0)),
        compiler_params=pltpu.CompilerParams(
            dimension_semantics=("parallel", "parallel", "parallel"),
            vmem_limit_bytes=48 << 20),
        cost_estimate=pl.CostEstimate(
            flops=0, transcendentals=0, bytes_accessed=2 * total_bytes),
    )(x4)

    return y4.reshape(shape)


if __name__ == "__main__":
    key = jax.random.PRNGKey(0)
    # NCHW-style input, matching the module's default axis=1 (channel flip).
    x = jax.random.normal(key, (2, 4, 16, 16), jnp.float32)

    # 1) Default axis=1, forced through the Pallas path (sublane-dense case:
    #    inner = 16*16 = 256 is a multiple of 128).
    y = feature_flip_forward(x, axis=1, min_pallas_bytes=0)
    jax.block_until_ready(y)
    assert y.shape == x.shape and y.dtype == x.dtype
    assert jnp.array_equal(y, jnp.flip(x, axis=1)), "flip(axis=1) mismatch"

    # 2) Spatial axis (inner = 16, not a 128-multiple -> full-lane block path).
    y2 = feature_flip_forward(x, axis=2, min_pallas_bytes=0)
    jax.block_until_ready(y2)
    assert jnp.array_equal(y2, jnp.flip(x, axis=2)), "flip(axis=2) mismatch"

    # 3) Ragged outer blocks (outer=5 with tile_o=2 under a tiny block budget).
    x3 = jax.random.normal(jax.random.PRNGKey(1), (5, 4, 16, 16), jnp.float32)
    y3 = feature_flip_forward(x3, axis=1, min_pallas_bytes=0,
                              max_block_bytes=8192)
    jax.block_until_ready(y3)
    assert jnp.array_equal(y3, jnp.flip(x3, axis=1)), "ragged outer mismatch"

    # 4) Inner tiling + ragged inner blocks (s_total=20, tile_s=8).
    x4 = jax.random.normal(jax.random.PRNGKey(2), (1, 2, 20, 128), jnp.float32)
    y4 = feature_flip_forward(x4, axis=1, min_pallas_bytes=0,
                              max_block_bytes=4096)
    jax.block_until_ready(y4)
    assert jnp.array_equal(y4, jnp.flip(x4, axis=1)), "tiled inner mismatch"

    # 5) bf16 dtype (sublane packing = 16).
    xb = x.astype(jnp.bfloat16)
    yb = feature_flip_forward(xb, axis=1, min_pallas_bytes=0)
    jax.block_until_ready(yb)
    assert jnp.array_equal(yb, jnp.flip(xb, axis=1)), "bf16 flip mismatch"

    # 6) Wrapper dispatch paths: last-axis flip and tiny-tensor short circuit.
    y_last = feature_flip_forward(x, axis=-1)
    jax.block_until_ready(y_last)
    assert jnp.array_equal(y_last, jnp.flip(x, axis=-1)), "flip(axis=-1) mismatch"
    y_small = feature_flip_forward(x, axis=1)  # default min_pallas_bytes
    jax.block_until_ready(y_small)
    assert jnp.array_equal(y_small, jnp.flip(x, axis=1)), "small-path mismatch"

    print("KERNEL_OK")
</pallas_src>

<mosaic_0001>
module attributes {stable_mosaic.version = 11 : i64} {
  func.func @_copy_kernel(%arg0: i32, %arg1: i32, %arg2: i32, %arg3: memref<2x1x2x128xf32, #tpu.memory_space<vmem>>, %arg4: memref<2x1x2x128xf32, #tpu.memory_space<vmem>>) attributes {dimension_semantics = [#tpu.dimension_semantics<parallel>, #tpu.dimension_semantics<parallel>, #tpu.dimension_semantics<parallel>], iteration_bounds = array<i64: 1, 4, 1>, scalar_prefetch = 0 : i64, scratch_operands = 0 : i64, tpu.core_type = #tpu.core_type<tc>, window_params = [{transform_indices = @transform_0, window_bounds = array<i64: 2, 1, 2, 128>}, {transform_indices = @transform_1, window_bounds = array<i64: 2, 1, 2, 128>}]} {
    %c0 = arith.constant 0 : index
    %c0_0 = arith.constant 0 : index
    %c0_1 = arith.constant 0 : index
    %c0_2 = arith.constant 0 : index
    %0 = vector.load %arg3[%c0, %c0_0, %c0_1, %c0_2] : memref<2x1x2x128xf32, #tpu.memory_space<vmem>>, vector<2x1x2x128xf32>
    %c0_3 = arith.constant 0 : index
    %c0_4 = arith.constant 0 : index
    %c0_5 = arith.constant 0 : index
    %c0_6 = arith.constant 0 : index
    %1 = vector.load %arg4[%c0_3, %c0_4, %c0_5, %c0_6] : memref<2x1x2x128xf32, #tpu.memory_space<vmem>>, vector<2x1x2x128xf32>
    tpu.vector_store %arg4[%c0_3, %c0_4, %c0_5, %c0_6], %0 {strides = array<i32>} : memref<2x1x2x128xf32, #tpu.memory_space<vmem>>, vector<2x1x2x128xf32>,
    return
  }
  func.func @transform_0(%arg0: i32, %arg1: i32, %arg2: i32) -> (i32, i32, i32, i32) {
    %c0_i32 = arith.constant 0 : i32
    %c0_i32_0 = arith.constant 0 : i32
    return %arg0, %arg1, %arg2, %c0_i32 : i32, i32, i32, i32
  }
  func.func @transform_1(%arg0: i32, %arg1: i32, %arg2: i32) -> (i32, i32, i32, i32) {
    %c3_i32 = arith.constant 3 : i32
    %0 = arith.subi %c3_i32, %arg1 : i32
    %c0_i32 = arith.constant 0 : i32
    %c0_i32_0 = arith.constant 0 : i32
    return %arg0, %0, %arg2, %c0_i32 : i32, i32, i32, i32
  }
}

</mosaic_0001>

<bundles_post_ra>
// kernel: feature_flip_forward.1
= control target key start
LH: loop header
LB: loop body
LE: loop exit
PB: predicated region body
PF: predicated region fallthrough
CT: control target
= control target key end

     0   :  { %s446_s6 = smov 0   ;;  %s448_s7 = smov 0   ;;  %s549_s0 = inlined_call_operand.vmem [shape: f32[2,4,2,128], index: 0, kind: input, shape index: {}]   ;;  %s550_s1 = inlined_call_operand.vmem [shape: f32[2,4,2,128], index: 1, kind: output, shape index: {}]  }
   0x1   :  { %s450_s8 = smov 0   ;;  %s452_s9 = smov 0  }
   0x2   :  { %s454_s10 = smov 0   ;;  %s456_s11 = smov 0  }
   0x3   :  { %s458_s12 = smov 0  }
   0x4 LB: > { %s311_s13 = sadd.s32 4294967295, %s434_s12   ;;  %s26_s14 = sadd.s32 1, %s430_s11  ;;  %s434_s12 = sphi %s458_s12, %s11_s12   ;;  %s430_s11 = sphi %s456_s11, %s558_s11   ;;  %s426_s10 = sphi %s454_s10, %s557_s10   ;;  %s422_s9 = sphi %s452_s9, %s556_s9   ;;  %s418_s8 = sphi %s450_s8, %s555_s8   ;;  %s414_s7 = sphi %s448_s7, %s554_s7   ;;  %s410_s6 = sphi %s446_s6, %s553_s6  }
   0x5   : > { %p28_p0 = scmp.ge.s32.totalorder %s26_s14, 4  ;;  %s41_s15 = sadd.s32 1, %s422_s9 }
   0x6   : > { %p48_p1 = scmp.ne.s32.totalorder %s422_s9, %s418_s8  ;;  %p49_p2 = scmp.eq.s32.totalorder %s434_s12, 0 }
   0x7   : > { %s560_s14 = smov (%p28_p0, %s26_s14), 0  ;;  %s64_s17 = ssub.s32 3, %s430_s11 }
   0x8   : > { %p489_p3 = por %p49_p2, %p48_p1  ;;  %s35_s18 = ssub.s32 %s430_s11, %s560_s14 }
   0x9   : > { %s65_s19 = ssub.s32 3, %s560_s14  ;;  %p39_p4 = scmp.eq.s32.totalorder %s35_s18, 0 }
   0xa   : > { %s67_s20 = ssub.s32 %s64_s17, %s65_s19  ;;  %s73_s21 = sadd.s32 1, %s414_s7 }
   0xb   : > { %p71_p5 = scmp.eq.s32.totalorder %s67_s20, 0  ;;  %p83_p6 = scmp.ne.s32.totalorder %s414_s7, %s410_s6 }
   0xc   : > { %s499_s22 = scalar_select %p39_p4, %s422_s9, %s41_s15  }
   0xd   : > { %s502_s23 = scalar_select %p71_p5, %s414_s7, %s73_s21  }
   0xe   : > { %p84_p7 = scmp.eq.s32.totalorder %s311_s13, 3  ;;  %p314_p9 = scmp.ge.s32.totalorder %s434_s12, 4 }
  0x10   : > { %p506_p8 = por %p84_p7, %p83_p6  ;;  %106 = sbr.rel (%p314_p9) target bundleno = 30 (0x1e), region = 16 }
  0x17   : > { %109 = sbr.rel (!%p489_p3) target bundleno = 30 (0x1e), region = 20  ;;  %s111_s25 = sand.u32 (%p489_p3), 1, %s422_s9  }
  0x18   : > { %s316_s26 = sshll.u32 (%p489_p3), %s430_s11, 1  ;;  %s315_s27 = sshll.u32 (%p489_p3), %s111_s25, 2 }
  0x19   : > { %s119_s30 = scalar_lea.vmem (%p489_p3), %s549_s0, %s316_s26  ;;  %s113_s2 = scalar_lea.vmem (%p489_p3), [#allocation2], %s315_s27 }
  0x1a   : > { %v135_v0 = vld [vmem:[%s119_s30] sm:$0x3] (%p489_p3)  ;;  %v137_v1 = vld [vmem:[%s119_s30 + $0x8] sm:$0x3] (%p489_p3) }
  0x1b   : > { %136 = vst [vmem:[%s113_s2] sm:$0x3] (%p489_p3), %v135_v0  ;;  %138 = vst [vmem:[%s113_s2 + $0x2] sm:$0x3] (%p489_p3), %v137_v1 }
  0x1e PF: > { %p317_p10 = scmp.ge.s32.totalorder %s434_s12, 1  ;;  %p156_p11 = scmp.lt.s32.totalorder %s434_s12, 5 }
  0x20   : > { %p157_p12 = pnand %p317_p10, %p156_p11 }
  0x21   : > { %s163_s3 = sand.u32 (!%p157_p12), 1, %s418_s8   ;;  %s178_s4 = sand.u32 (!%p157_p12), 1, %s410_s6  }
  0x22   : > { %160 = sbr.rel (%p157_p12) target bundleno = 48 (0x30), region = 54  ;;  %s318_s5 = sshll.u32 (!%p157_p12), %s163_s3, 2 }
  0x23   : > { %s319_s13 = sshll.u32 (!%p157_p12), %s178_s4, 2  ;;  %s165_s15 = scalar_lea.vmem (!%p157_p12), [#allocation2], %s318_s5 }
  0x24   : > { %v184_v2 = vld [vmem:[%s165_s15] sm:$0xf] (!%p157_p12)   ;;  %s180_s16 = scalar_lea.vmem (!%p157_p12), [#allocation3], %s319_s13 }
  0x25   : > { %186 = vst [vmem:[%s180_s16] sm:$0xf] (!%p157_p12), %v184_v2  }
  0x29   : > { %194 = sbr.rel (!%p506_p8) target bundleno = 48 (0x30), region = 62  ;;  %s195_s17 = ssub.s32 (%p506_p8), 3, %s426_s10 }
  0x2a   : > { %s321_s18 = sshll.u32 (%p506_p8), %s195_s17, 1 }
  0x2b   : > { %s201_s21 = scalar_lea.vmem (%p506_p8), %s550_s1, %s321_s18 }
  0x2c   : > { %v217_v3 = vld [vmem:[%s180_s16] sm:$0x3] (%p506_p8)  ;;  %v219_v4 = vld [vmem:[%s180_s16 + $0x2] sm:$0x3] (%p506_p8) }
  0x2d   : > { %218 = vst [vmem:[%s201_s21] sm:$0x3] (%p506_p8), %v217_v3  ;;  %220 = vst [vmem:[%s201_s21 + $0x8] sm:$0x3] (%p506_p8), %v219_v4 }
  0x30 PF: > { %s11_s12 = sadd.s32 1, %s434_s12   ;;  %s553_s6 = smov %s414_s7 }
  0x31   : > { %p8_p13 = scmp.ge.s32.totalorder %s11_s12, 6   ;;  %s554_s7 = smov %s502_s23 }
  0x32   : > { %s555_s8 = smov %s422_s9  ;;  %s556_s9 = smov %s499_s22 }
  0x33   : > { %s557_s10 = smov %s430_s11  ;;  %s558_s11 = smov %s560_s14 }
  0x34   :  { %10 = sbr.rel (!%p8_p13) target bundleno = 4 (0x4), region = 127 }

</bundles_post_ra>
